<compile_context>
chip_gen: v6e
topology: v6e:2x2x1
jax: 0.10.0
libtpu: 0.0.40
codegen_flags: <defaults>
</compile_context>

<pallas_src>
import functools

import jax
import jax.numpy as jnp
from jax.experimental import pallas as pl
from jax.experimental.pallas import tpu as pltpu


# --------------------------------------------------------------------------- #
# Kernel
# --------------------------------------------------------------------------- #
def _gbn_kernel(x_ref, w_ref, b_ref, y_ref, mean_ref, var_ref, *,
                eps, inv_l, inv_lm1, low_precision_norm):
    # x_ref / y_ref: (Np, Ct, HW)     w_ref / b_ref: (C, 1) (resident, DMA'd once)
    # mean_ref / var_ref: (Ct, 1)
    np_, ct, hw = x_ref.shape
    ci = pl.program_id(1)

    # Per-channel pilot (mean of the first micro-batch plane) shifts the
    # one-pass sums: robust against catastrophic cancellation when |mean|>>std.
    pilot = jnp.mean(x_ref[0].astype(jnp.float32), axis=1, keepdims=True)  # (Ct,1)

    def stat_body(i, carry):
        s, q = carry
        row = x_ref[i].astype(jnp.float32) - pilot        # one (Ct, HW) plane
        return s + row, q + row * row

    zeros = jnp.zeros((ct, hw), jnp.float32)
    if np_ <= 8:                                          # trace-time unroll
        s_pl, q_pl = zeros, zeros
        for i in range(np_):
            s_pl, q_pl = stat_body(i, (s_pl, q_pl))
    else:
        s_pl, q_pl = jax.lax.fori_loop(0, np_, stat_body, (zeros, zeros))

    # One cross-lane (XLU) reduce per quantity.
    s = jnp.sum(s_pl, axis=1, keepdims=True)              # (Ct, 1)
    q = jnp.sum(q_pl, axis=1, keepdims=True)              # (Ct, 1)
    sm = s * inv_l
    mean = pilot + sm
    # unbiased variance (torch.var default); clamp tiny negative round-off.
    var = jnp.maximum((q - s * sm) * inv_lm1, 0.0)
    inv_std = jax.lax.rsqrt(var + eps)                    # only Ct rsqrts

    # Slice this step's channels out of the resident (C, 1) weight/bias.
    c0 = pl.multiple_of(ci * ct, ct)
    w = w_ref[pl.ds(c0, ct), :]                           # (Ct, 1)
    b = b_ref[pl.ds(c0, ct), :]                           # (Ct, 1)
    scale = w * inv_std
    shift = b - mean * scale

    if low_precision_norm:
        # bf16 normalize pass (scale/shift cast once); keeps v7x memory-bound.
        scale_x = scale.astype(x_ref.dtype)
        shift_x = shift.astype(x_ref.dtype)

        def write_plane(i):
            y_ref[i] = (x_ref[i] * scale_x + shift_x).astype(y_ref.dtype)
    else:
        def write_plane(i):
            y_ref[i] = (x_ref[i].astype(jnp.float32) * scale
                        + shift).astype(y_ref.dtype)

    if np_ <= 8:
        for i in range(np_):
            write_plane(i)
    else:
        def norm_body(i, carry):
            write_plane(i)
            return carry
        jax.lax.fori_loop(0, np_, norm_body, 0)

    mean_ref[...] = mean
    var_ref[...] = var


# --------------------------------------------------------------------------- #
# Trace-time hardware / tiling heuristics
# --------------------------------------------------------------------------- #
def _sublane_gran(dtype):
    # Sublane packing granularity: 8 rows f32, 16 bf16, 32 int8/fp8.
    return max(8, 32 // jnp.dtype(dtype).itemsize)


def _hw_config():
    """Returns (vmem_limit_bytes, target_block_bytes, multi_tc, is_v5e)."""
    cap = 64 * 1024 * 1024  # conservative default (v7x physical VMEM)
    try:
        info = pltpu.get_tpu_info()
        cap_attr = getattr(info, "vmem_capacity_bytes", None)
        if cap_attr:
            cap = int(cap_attr)
    except Exception:
        pass
    # v7x (64 MiB)  -> 48 MiB scoped limit, ~4 MiB blocks
    # v5e/v6e (128) -> 64 MiB scoped limit, ~5 MiB blocks
    vmem_limit = min(max((cap * 3) // 4, 32 * 1024 * 1024), 64 * 1024 * 1024)
    target_block = max(2 * 1024 * 1024, vmem_limit // 12)

    kind = ""
    try:
        kind = jax.devices()[0].device_kind.lower()
    except Exception:
        pass
    multi_tc = any(tag in kind for tag in ("v4", "v5p", "v7", "7x"))
    is_v5e = ("v5 lite" in kind) or ("v5e" in kind) or ("v5litepod" in kind)
    return vmem_limit, target_block, multi_tc, is_v5e


def _pick_c_tile(C, Np, HW, dtype, target_block_bytes, min_grid_steps, G):
    """Channel tile: aligned divisor of C whose (Np, Ct, HW) block ~fits budget."""
    gran = _sublane_gran(dtype)
    itemsize = jnp.dtype(dtype).itemsize
    row_bytes = max(1, Np * HW * itemsize)
    budget = max(1, target_block_bytes // row_bytes)

    def largest_aligned_divisor(limit):
        d = (min(limit, C) // gran) * gran
        while d >= gran:
            if C % d == 0:
                return d
            d -= gran
        return None

    if budget >= C:
        ct = C
    else:
        ct = largest_aligned_divisor(budget)
        if ct is None:
            # No aligned divisor fits the budget; fall back to whole C.
            # TODO(synk): two-phase HW-tiled fallback for very large Np*H*W.
            ct = C

    # Multi-TensorCore chips (v7x / megacore): make sure both cores get work.
    if min_grid_steps > 1 and G * (C // ct) < min_grid_steps and ct > gran:
        want_nc = -(-min_grid_steps // G)  # ceil
        smaller = largest_aligned_divisor(max(gran, C // want_nc))
        if smaller is not None and smaller < ct:
            ct = smaller
    return ct


# --------------------------------------------------------------------------- #
# Wrapper
# --------------------------------------------------------------------------- #
def gbn_forward(x, weight, bias, running_mean, running_var, *,
                micro_in_macro, eps=1e-5, momentum=0.1, c_tile=None):
    """Training-mode forward of _GBN.

    Args:
      x: (N, C, H, W) float32/bfloat16 (NCHW, as in PyTorch).
      weight, bias: (C,) affine parameters.
      running_mean, running_var: (G, 1, C, 1, 1) running stats.
    Returns:
      y: (N, C, H, W), new_running_mean, new_running_var (same shapes as input).
    """
    N, C, H, W = x.shape
    G = micro_in_macro
    assert N % G == 0, "batch must be divisible by micro_in_macro"
    Np = N // G
    HW = H * W
    L = Np * HW
    assert L > 1, "unbiased variance requires more than one element per (g, c)"
    # TODO(synk): when HW < 128 the lane axis is under-filled; folding adjacent
    #   channels into the lane axis (free reshape in NCHW) would restore lane
    #   density for late conv stages (7x7/8x8). Correct as-is, just less dense.

    vmem_limit, target_block, multi_tc, is_v5e = _hw_config()

    # Free view (no data movement): NCHW row-major == (G, Np, C, HW) row-major.
    xg = x.reshape(G, Np, C, HW)
    w2 = weight.reshape(C, 1).astype(jnp.float32)
    b2 = bias.reshape(C, 1).astype(jnp.float32)

    gran = _sublane_gran(x.dtype)
    if c_tile is None:
        Ct = _pick_c_tile(C, Np, HW, x.dtype, target_block,
                          4 if multi_tc else 1, G)
    else:
        Ct = c_tile
        assert Ct == C or (C % Ct == 0 and Ct % gran == 0), (
            "c_tile must divide C and be a multiple of the sublane granularity")
    n_c = C // Ct if C % Ct == 0 else 1
    if C % Ct != 0:   # defensive: never emit padded channel blocks
        Ct, n_c = C, 1

    # bf16 normalize path everywhere except v5e (no bf16 VALU there).
    low_precision_norm = (x.dtype == jnp.bfloat16) and (not is_v5e)

    kernel = functools.partial(
        _gbn_kernel, eps=float(eps), inv_l=1.0 / L, inv_lm1=1.0 / (L - 1),
        low_precision_norm=low_precision_norm)

    y_g, mean_g, var_g = pl.pallas_call(
        kernel,
        out_shape=(
            jax.ShapeDtypeStruct((G, Np, C, HW), x.dtype),
            jax.ShapeDtypeStruct((G, C, 1), jnp.float32),
            jax.ShapeDtypeStruct((G, C, 1), jnp.float32),
        ),
        grid_spec=pltpu.PrefetchScalarGridSpec(
            num_scalar_prefetch=0,
            grid=(G, n_c),
            in_specs=[
                # x: squeeze G; Np whole, C tiled, HW whole (lane-dense).
                pl.BlockSpec((None, Np, Ct, HW), lambda g, ci: (g, 0, ci, 0)),
                # weight/bias: full array, constant index -> DMA'd only once.
                pl.BlockSpec((C, 1), lambda g, ci: (0, 0)),
                pl.BlockSpec((C, 1), lambda g, ci: (0, 0)),
            ],
            out_specs=[
                pl.BlockSpec((None, Np, Ct, HW), lambda g, ci: (g, 0, ci, 0)),
                pl.BlockSpec((None, Ct, 1), lambda g, ci: (g, ci, 0)),
                pl.BlockSpec((None, Ct, 1), lambda g, ci: (g, ci, 0)),
            ],
        ),
        compiler_params=pltpu.CompilerParams(
            dimension_semantics=("parallel", "parallel"),
            vmem_limit_bytes=int(vmem_limit),
        ),
    )(xg, w2, b2)

    # Free views back to the module's layouts (no transposes).
    y = y_g.reshape(N, C, H, W)
    mean5 = mean_g.reshape(G, 1, C, 1, 1)
    var5 = var_g.reshape(G, 1, C, 1, 1)
    new_rm = running_mean * (1.0 - momentum) + mean5 * momentum
    new_rv = running_var * (1.0 - momentum) + var5 * momentum
    return y, new_rm, new_rv


# --------------------------------------------------------------------------- #
# Pure-JAX reference (matches the PyTorch training-mode forward)
# --------------------------------------------------------------------------- #
def _gbn_reference(x, weight, bias, running_mean, running_var, micro_in_macro,
                   eps=1e-5, momentum=0.1):
    N, C, H, W = x.shape
    G = micro_in_macro
    xg = x.reshape(G, N // G, C, H, W)
    mean = jnp.mean(xg, axis=(1, 3, 4), keepdims=True)
    n = (N // G) * H * W
    var = jnp.sum((xg - mean) ** 2, axis=(1, 3, 4), keepdims=True) / (n - 1)
    x_hat = (xg - mean) / jnp.sqrt(var + eps)
    x_hat = x_hat.reshape(N, C, H, W)
    y = x_hat * weight.reshape(1, C, 1, 1) + bias.reshape(1, C, 1, 1)
    new_rm = running_mean * (1.0 - momentum) + mean * momentum
    new_rv = running_var * (1.0 - momentum) + var * momentum
    return y, new_rm, new_rv


if __name__ == "__main__":
    # ---- Config 1: batch=4 split into G=2 micro-batches, C=4, 16x16 spatial.
    N, C, H, W = 4, 4, 16, 16
    G = 2
    key = jax.random.PRNGKey(0)
    x = jax.random.normal(key, (N, C, H, W), dtype=jnp.float32)

    # reset_parameters(): weight=ones, bias=zeros, running_mean=0, running_var=1
    weight = jnp.ones((C,), jnp.float32)
    bias = jnp.zeros((C,), jnp.float32)
    running_mean = jnp.zeros((G, 1, C, 1, 1), jnp.float32)
    running_var = jnp.ones((G, 1, C, 1, 1), jnp.float32)

    y, new_rm, new_rv = gbn_forward(
        x, weight, bias, running_mean, running_var,
        micro_in_macro=G, eps=1e-5, momentum=0.1)
    jax.block_until_ready((y, new_rm, new_rv))

    y_ref, rm_ref, rv_ref = _gbn_reference(
        x, weight, bias, running_mean, running_var, G, eps=1e-5, momentum=0.1)
    assert jnp.allclose(y, y_ref, atol=1e-5, rtol=1e-5), "y mismatch (config 1)"
    assert jnp.allclose(new_rm, rm_ref, atol=1e-6, rtol=1e-5), "running_mean mismatch"
    assert jnp.allclose(new_rv, rv_ref, atol=1e-6, rtol=1e-5), "running_var mismatch"

    # ---- Config 2: non-trivial affine, C=16 with c_tile=8 (multi-block grid).
    N2, C2, H2, W2, G2 = 4, 16, 8, 8, 2
    k1, k2, k3 = jax.random.split(jax.random.PRNGKey(1), 3)
    x2 = jax.random.normal(k1, (N2, C2, H2, W2), jnp.float32)
    w2 = jax.random.normal(k2, (C2,), jnp.float32)
    b2 = jax.random.normal(k3, (C2,), jnp.float32)
    rm2 = jnp.zeros((G2, 1, C2, 1, 1), jnp.float32)
    rv2 = jnp.ones((G2, 1, C2, 1, 1), jnp.float32)

    y2, nrm2, nrv2 = gbn_forward(
        x2, w2, b2, rm2, rv2, micro_in_macro=G2, eps=1e-5, momentum=0.1,
        c_tile=8)
    jax.block_until_ready((y2, nrm2, nrv2))

    y2_ref, rm2_ref, rv2_ref = _gbn_reference(x2, w2, b2, rm2, rv2, G2)
    assert jnp.allclose(y2, y2_ref, atol=1e-5, rtol=1e-5), "y mismatch (config 2)"
    assert jnp.allclose(nrm2, rm2_ref, atol=1e-6, rtol=1e-5), "running_mean mismatch (2)"
    assert jnp.allclose(nrv2, rv2_ref, atol=1e-6, rtol=1e-5), "running_var mismatch (2)"

    # ---- Config 3: bf16 input exercises the low-precision normalize path
    #      (falls back to the f32 normalize automatically on v5e).
    N3, C3, H3, W3, G3 = 4, 16, 8, 8, 2
    k4, k5, k6 = jax.random.split(jax.random.PRNGKey(2), 3)
    x3 = jax.random.normal(k4, (N3, C3, H3, W3), jnp.float32).astype(jnp.bfloat16)
    w3 = jax.random.normal(k5, (C3,), jnp.float32)
    b3 = jax.random.normal(k6, (C3,), jnp.float32)
    rm3 = jnp.zeros((G3, 1, C3, 1, 1), jnp.float32)
    rv3 = jnp.ones((G3, 1, C3, 1, 1), jnp.float32)

    y3, nrm3, nrv3 = gbn_forward(
        x3, w3, b3, rm3, rv3, micro_in_macro=G3, eps=1e-5, momentum=0.1)
    jax.block_until_ready((y3, nrm3, nrv3))

    y3_ref, rm3_ref, rv3_ref = _gbn_reference(
        x3.astype(jnp.float32), w3, b3, rm3, rv3, G3)
    assert jnp.allclose(y3.astype(jnp.float32), y3_ref, atol=0.15, rtol=0.05), \
        "y mismatch (config 3, bf16)"
    assert jnp.allclose(nrm3, rm3_ref, atol=1e-4, rtol=1e-3), "running_mean mismatch (3)"
    assert jnp.allclose(nrv3, rv3_ref, atol=1e-4, rtol=1e-3), "running_var mismatch (3)"

    print("KERNEL_OK")
</pallas_src>

<mosaic_0001>
module attributes {stable_mosaic.version = 11 : i64} {
  func.func @_gbn_kernel(%arg0: i32, %arg1: i32, %arg2: memref<1x2x4x256xf32, #tpu.memory_space<vmem>>, %arg3: memref<4x1xf32, #tpu.memory_space<vmem>>, %arg4: memref<4x1xf32, #tpu.memory_space<vmem>>, %arg5: memref<1x2x4x256xf32, #tpu.memory_space<vmem>>, %arg6: memref<1x4x1xf32, #tpu.memory_space<vmem>>, %arg7: memref<1x4x1xf32, #tpu.memory_space<vmem>>) attributes {dimension_semantics = [#tpu.dimension_semantics<parallel>, #tpu.dimension_semantics<parallel>], iteration_bounds = array<i64: 2, 1>, scalar_prefetch = 0 : i64, scratch_operands = 0 : i64, tpu.core_type = #tpu.core_type<tc>, window_params = [{transform_indices = @transform_0, window_bounds = array<i64: 1, 2, 4, 256>}, {pipeline_mode = #tpu.pipeline_mode<synchronous>, transform_indices = @transform_1, window_bounds = array<i64: 4, 1>}, {pipeline_mode = #tpu.pipeline_mode<synchronous>, transform_indices = @transform_2, window_bounds = array<i64: 4, 1>}, {transform_indices = @transform_3, window_bounds = array<i64: 1, 2, 4, 256>}, {transform_indices = @transform_4, window_bounds = array<i64: 1, 4, 1>}, {transform_indices = @transform_5, window_bounds = array<i64: 1, 4, 1>}]} {
    %c0 = arith.constant 0 : index
    %c0_0 = arith.constant 0 : index
    %c0_1 = arith.constant 0 : index
    %c0_2 = arith.constant 0 : index
    %0 = vector.load %arg2[%c0, %c0_0, %c0_1, %c0_2] : memref<1x2x4x256xf32, #tpu.memory_space<vmem>>, vector<1x1x4x256xf32>
    %1 = vector.shape_cast %0 : vector<1x1x4x256xf32> to vector<4x256xf32>
    %cst = arith.constant dense<0.000000e+00> : vector<4xf32>
    %2 = vector.multi_reduction <add>, %1, %cst [1] : vector<4x256xf32> to vector<4xf32>
    %3 = vector.shape_cast %2 : vector<4xf32> to vector<4x1xf32>
    %cst_3 = arith.constant 2.560000e+02 : f32
    %4 = vector.broadcast %cst_3 : f32 to vector<4x1xf32>
    %5 = arith.divf %3, %4 : vector<4x1xf32>
    %cst_4 = arith.constant 0.000000e+00 : f32
    %6 = vector.broadcast %cst_4 : f32 to vector<4x256xf32>
    %c0_5 = arith.constant 0 : index
    %c0_6 = arith.constant 0 : index
    %c0_7 = arith.constant 0 : index
    %c0_8 = arith.constant 0 : index
    %7 = vector.load %arg2[%c0_5, %c0_6, %c0_7, %c0_8] : memref<1x2x4x256xf32, #tpu.memory_space<vmem>>, vector<1x1x4x256xf32>
    %8 = vector.shape_cast %7 : vector<1x1x4x256xf32> to vector<4x256xf32>
    %9 = vector.broadcast %5 : vector<4x1xf32> to vector<4x256xf32>
    %10 = arith.subf %8, %9 : vector<4x256xf32>
    %11 = arith.addf %6, %10 : vector<4x256xf32>
    %12 = arith.mulf %10, %10 : vector<4x256xf32>
    %13 = arith.addf %6, %12 : vector<4x256xf32>
    %c0_9 = arith.constant 0 : index
    %c1 = arith.constant 1 : index
    %c0_10 = arith.constant 0 : index
    %c0_11 = arith.constant 0 : index
    %14 = vector.load %arg2[%c0_9, %c1, %c0_10, %c0_11] : memref<1x2x4x256xf32, #tpu.memory_space<vmem>>, vector<1x1x4x256xf32>
    %15 = vector.shape_cast %14 : vector<1x1x4x256xf32> to vector<4x256xf32>
    %16 = vector.broadcast %5 : vector<4x1xf32> to vector<4x256xf32>
    %17 = arith.subf %15, %16 : vector<4x256xf32>
    %18 = arith.addf %11, %17 : vector<4x256xf32>
    %19 = arith.mulf %17, %17 : vector<4x256xf32>
    %20 = arith.addf %13, %19 : vector<4x256xf32>
    %cst_12 = arith.constant dense<0.000000e+00> : vector<4xf32>
    %21 = vector.multi_reduction <add>, %18, %cst_12 [1] : vector<4x256xf32> to vector<4xf32>
    %22 = vector.shape_cast %21 : vector<4xf32> to vector<4x1xf32>
    %cst_13 = arith.constant dense<0.000000e+00> : vector<4xf32>
    %23 = vector.multi_reduction <add>, %20, %cst_13 [1] : vector<4x256xf32> to vector<4xf32>
    %24 = vector.shape_cast %23 : vector<4xf32> to vector<4x1xf32>
    %cst_14 = arith.constant 0.001953125 : f32
    %25 = vector.broadcast %cst_14 : f32 to vector<4x1xf32>
    %26 = arith.mulf %22, %25 : vector<4x1xf32>
    %27 = arith.addf %5, %26 : vector<4x1xf32>
    %28 = arith.mulf %22, %26 : vector<4x1xf32>
    %29 = arith.subf %24, %28 : vector<4x1xf32>
    %cst_15 = arith.constant 0.00195694715 : f32
    %30 = vector.broadcast %cst_15 : f32 to vector<4x1xf32>
    %31 = arith.mulf %29, %30 : vector<4x1xf32>
    %cst_16 = arith.constant 0.000000e+00 : f32
    %32 = vector.broadcast %cst_16 : f32 to vector<4x1xf32>
    %33 = arith.maximumf %31, %32 : vector<4x1xf32>
    %cst_17 = arith.constant 9.99999974E-6 : f32
    %34 = vector.broadcast %cst_17 : f32 to vector<4x1xf32>
    %35 = arith.addf %33, %34 : vector<4x1xf32>
    %36 = math.rsqrt %35 : vector<4x1xf32>
    %c4_i32 = arith.constant 4 : i32
    %37 = arith.muli %arg1, %c4_i32 : i32
    %38 = tpu.assume_multiple %37, 4 : i32
    %39 = arith.index_cast %38 : i32 to index
    %c0_18 = arith.constant 0 : index
    %40 = vector.load %arg3[%39, %c0_18] : memref<4x1xf32, #tpu.memory_space<vmem>>, vector<4x1xf32>
    %41 = arith.index_cast %38 : i32 to index
    %c0_19 = arith.constant 0 : index
    %42 = vector.load %arg4[%41, %c0_19] : memref<4x1xf32, #tpu.memory_space<vmem>>, vector<4x1xf32>
    %43 = arith.mulf %40, %36 : vector<4x1xf32>
    %44 = arith.mulf %27, %43 : vector<4x1xf32>
    %45 = arith.subf %42, %44 : vector<4x1xf32>
    %c0_20 = arith.constant 0 : index
    %c0_21 = arith.constant 0 : index
    %c0_22 = arith.constant 0 : index
    %c0_23 = arith.constant 0 : index
    %46 = vector.load %arg2[%c0_20, %c0_21, %c0_22, %c0_23] : memref<1x2x4x256xf32, #tpu.memory_space<vmem>>, vector<1x1x4x256xf32>
    %47 = vector.shape_cast %46 : vector<1x1x4x256xf32> to vector<4x256xf32>
    %48 = vector.broadcast %43 : vector<4x1xf32> to vector<4x256xf32>
    %49 = arith.mulf %47, %48 : vector<4x256xf32>
    %50 = vector.broadcast %45 : vector<4x1xf32> to vector<4x256xf32>
    %51 = arith.addf %49, %50 : vector<4x256xf32>
    %c0_24 = arith.constant 0 : index
    %c0_25 = arith.constant 0 : index
    %c0_26 = arith.constant 0 : index
    %c0_27 = arith.constant 0 : index
    %52 = vector.load %arg5[%c0_24, %c0_25, %c0_26, %c0_27] : memref<1x2x4x256xf32, #tpu.memory_space<vmem>>, vector<1x1x4x256xf32>
    %53 = vector.shape_cast %52 : vector<1x1x4x256xf32> to vector<4x256xf32>
    %54 = vector.shape_cast %51 : vector<4x256xf32> to vector<1x1x4x256xf32>
    tpu.vector_store %arg5[%c0_24, %c0_25, %c0_26, %c0_27], %54 {strides = array<i32>} : memref<1x2x4x256xf32, #tpu.memory_space<vmem>>, vector<1x1x4x256xf32>,
    %c0_28 = arith.constant 0 : index
    %c1_29 = arith.constant 1 : index
    %c0_30 = arith.constant 0 : index
    %c0_31 = arith.constant 0 : index
    %55 = vector.load %arg2[%c0_28, %c1_29, %c0_30, %c0_31] : memref<1x2x4x256xf32, #tpu.memory_space<vmem>>, vector<1x1x4x256xf32>
    %56 = vector.shape_cast %55 : vector<1x1x4x256xf32> to vector<4x256xf32>
    %57 = vector.broadcast %43 : vector<4x1xf32> to vector<4x256xf32>
    %58 = arith.mulf %56, %57 : vector<4x256xf32>
    %59 = vector.broadcast %45 : vector<4x1xf32> to vector<4x256xf32>
    %60 = arith.addf %58, %59 : vector<4x256xf32>
    %c0_32 = arith.constant 0 : index
    %c1_33 = arith.constant 1 : index
    %c0_34 = arith.constant 0 : index
    %c0_35 = arith.constant 0 : index
    %61 = vector.load %arg5[%c0_32, %c1_33, %c0_34, %c0_35] : memref<1x2x4x256xf32, #tpu.memory_space<vmem>>, vector<1x1x4x256xf32>
    %62 = vector.shape_cast %61 : vector<1x1x4x256xf32> to vector<4x256xf32>
    %63 = vector.shape_cast %60 : vector<4x256xf32> to vector<1x1x4x256xf32>
    tpu.vector_store %arg5[%c0_32, %c1_33, %c0_34, %c0_35], %63 {strides = array<i32>} : memref<1x2x4x256xf32, #tpu.memory_space<vmem>>, vector<1x1x4x256xf32>,
    %c0_36 = arith.constant 0 : index
    %c0_37 = arith.constant 0 : index
    %c0_38 = arith.constant 0 : index
    %64 = vector.load %arg6[%c0_36, %c0_37, %c0_38] : memref<1x4x1xf32, #tpu.memory_space<vmem>>, vector<1x4x1xf32>
    %65 = vector.shape_cast %64 : vector<1x4x1xf32> to vector<4x1xf32>
    %66 = vector.shape_cast %27 : vector<4x1xf32> to vector<1x4x1xf32>
    tpu.vector_store %arg6[%c0_36, %c0_37, %c0_38], %66 {strides = array<i32>} : memref<1x4x1xf32, #tpu.memory_space<vmem>>, vector<1x4x1xf32>,
    %c0_39 = arith.constant 0 : index
    %c0_40 = arith.constant 0 : index
    %c0_41 = arith.constant 0 : index
    %67 = vector.load %arg7[%c0_39, %c0_40, %c0_41] : memref<1x4x1xf32, #tpu.memory_space<vmem>>, vector<1x4x1xf32>
    %68 = vector.shape_cast %67 : vector<1x4x1xf32> to vector<4x1xf32>
    %69 = vector.shape_cast %33 : vector<4x1xf32> to vector<1x4x1xf32>
    tpu.vector_store %arg7[%c0_39, %c0_40, %c0_41], %69 {strides = array<i32>} : memref<1x4x1xf32, #tpu.memory_space<vmem>>, vector<1x4x1xf32>,
    return
  }
  func.func @transform_0(%arg0: i32, %arg1: i32) -> (i32, i32, i32, i32) {
    %c0_i32 = arith.constant 0 : i32
    %c0_i32_0 = arith.constant 0 : i32
    %c0_i32_1 = arith.constant 0 : i32
    return %arg0, %c0_i32, %arg1, %c0_i32_0 : i32, i32, i32, i32
  }
  func.func @transform_1(%arg0: i32, %arg1: i32) -> (i32, i32) {
    %c0_i32 = arith.constant 0 : i32
    %c0_i32_0 = arith.constant 0 : i32
    %c0_i32_1 = arith.constant 0 : i32
    return %c0_i32, %c0_i32_0 : i32, i32
  }
  func.func @transform_2(%arg0: i32, %arg1: i32) -> (i32, i32) {
    %c0_i32 = arith.constant 0 : i32
    %c0_i32_0 = arith.constant 0 : i32
    %c0_i32_1 = arith.constant 0 : i32
    return %c0_i32, %c0_i32_0 : i32, i32
  }
  func.func @transform_3(%arg0: i32, %arg1: i32) -> (i32, i32, i32, i32) {
    %c0_i32 = arith.constant 0 : i32
    %c0_i32_0 = arith.constant 0 : i32
    %c0_i32_1 = arith.constant 0 : i32
    return %arg0, %c0_i32, %arg1, %c0_i32_0 : i32, i32, i32, i32
  }
  func.func @transform_4(%arg0: i32, %arg1: i32) -> (i32, i32, i32) {
    %c0_i32 = arith.constant 0 : i32
    %c0_i32_0 = arith.constant 0 : i32
    return %arg0, %arg1, %c0_i32 : i32, i32, i32
  }
  func.func @transform_5(%arg0: i32, %arg1: i32) -> (i32, i32, i32) {
    %c0_i32 = arith.constant 0 : i32
    %c0_i32_0 = arith.constant 0 : i32
    return %arg0, %arg1, %c0_i32 : i32, i32, i32
  }
}

</mosaic_0001>

<bundles_post_ra>
// kernel: tpu_custom_call.1
= control target key start
LH: loop header
LB: loop body
LE: loop exit
PB: predicated region body
PF: predicated region fallthrough
CT: control target
= control target key end

     0   :  { %11 = vsyncpa [#allocation3], 0  ;;  %s1005_s0 = inlined_call_operand.hbm [shape: f32[2,2,4,256], index: 0, kind: input, shape index: {}]   ;;  %s1006_s1 = inlined_call_operand.vmem [shape: f32[4,1], index: 1, kind: input, shape index: {}]   ;;  %s1007_s2 = inlined_call_operand.vmem [shape: f32[4,1], index: 2, kind: input, shape index: {}]   ;;  %s1008_s3 = inlined_call_operand.hbm [shape: f32[2,2,4,256], index: 3, kind: output, shape index: {0}]   ;;  %s1009_s4 = inlined_call_operand.vmem [shape: f32[2,4,1], index: 4, kind: output, shape index: {1}]   ;;  %s1010_s5 = inlined_call_operand.vmem [shape: f32[2,4,1], index: 5, kind: output, shape index: {2}]  }
   0x1   :  { %13 = vsyncpa [#allocation3 + $0x1], 0 }
   0x2   :  { %14 = vsyncpa [#allocation4], 0 }
   0x3   :  { %16 = vsyncpa [#allocation4 + $0x1], 0  ;;  %s828_s18 = smov 0   ;;  %s830_s19 = smov 0  }
   0x4   :  { %s832_s20 = smov 0   ;;  %s834_s21 = smov 0  }
   0x5   :  { %s836_s22 = smov 0   ;;  %s838_s23 = smov 0  }
   0x6 LB: > { %s585_s24 = sadd.s32 4294967295, %s788_s23   ;;  %s586_s25 = sadd.s32 4294967294, %s788_s23   ;;  %s788_s23 = sphi %s838_s23, %s22_s23   ;;  %s784_s22 = sphi %s836_s22, %s1021_s22   ;;  %s780_s21 = sphi %s834_s21, %s1020_s21   ;;  %s776_s20 = sphi %s832_s20, %s1019_s20   ;;  %s772_s19 = sphi %s830_s19, %s1018_s19   ;;  %s768_s18 = sphi %s828_s18, %s1017_s18  }
   0x7   : > { %s34_s26 = sadd.s32 1, %s784_s22  ;;  %s43_s27 = sadd.s32 1, %s776_s20 }
   0x8   : > { %p36_p0 = scmp.ge.s32.totalorder %s34_s26, 2  ;;  %p50_p1 = scmp.ne.s32.totalorder %s776_s20, %s772_s19 }
   0x9   : > { %p51_p2 = scmp.eq.s32.totalorder %s788_s23, 0  ;;  %p56_p3 = scmp.ne.s32.totalorder %s772_s19, %s768_s18 }
   0xa   : > { %s1023_s26 = smov (%p36_p0, %s34_s26), 0  ;;  %p57_p5 = scmp.eq.s32.totalorder %s585_s24, 0 }
   0xb   : > { %p869_p4 = por %p51_p2, %p50_p1  ;;  %s38_s29 = ssub.s32 %s784_s22, %s1023_s26 }
   0xc   : > { %p124_p6 = scmp.eq.s32.totalorder %s585_s24, 1  ;;  %p41_p7 = scmp.eq.s32.totalorder %s38_s29, 0 }
   0xd   : > { %p875_p8 = por %p57_p5, %p56_p3  ;;  %p130_p10 = scmp.eq.s32.totalorder %s586_s25, 1 }
   0xe   : > { %p879_p9 = por %p124_p6, %p50_p1  ;;  %p619_p13 = scmp.lt.s32.totalorder %s788_s23, 2 }
   0xf   : > { %s884_s7 = scalar_select %p41_p7, %s776_s20, %s43_s27  }
  0x10   : > { %p886_p11 = por %p130_p10, %p56_p3  ;;  %s212_s9 = sand.u32 1, %s776_s20  }
  0x11   : > { %s589_s10 = sshll.u32 %s212_s9, 4  ;;  %s605_s11 = sshll.u32 %s784_s22, 8 }
  0x12   : > { %s224_s14 = scalar_lea.hbm %s1005_s0, %s605_s11  ;;  %s216_s15 = scalar_lea.vmem [#allocation2], %s589_s10 }
  0x13   : > { %s225_s16 = sshll.u32 %s216_s15, 4  ;;  %p899_p0 = pnand %p619_p13, %p869_p4  ;;  %s226_s16 = int_to_ptr.vmem [resolvable:$true] %s225_s16 }
  0x14   : > { %p592_p1 = scmp.ge.s32.totalorder %s788_s23, 1  ;;  %s213_s24 = scalar_lea.sflag [#allocation3], %s212_s9 }
  0x15   : > { %p682_p2 = pneg %p899_p0  ;;  %s693_s25 = scalar_lea.vmem %s226_s16, 256 }
  0x16   : > { %p694_p3 = scmp.ne.s32.totalorder %s226_s16, %s693_s25  ;;  %s790_s27 = smov [#allocation2]  }
  0x17   : > { %s698_s29 = sshll.u32 %s790_s27, 4  ;;  %s699_s29 = int_to_ptr.vmem [resolvable:$false] %s698_s29 }
  0x18   : > { %p696_p5 = pnand %p694_p3, %p682_p2  ;;  %s700_s10 = scalar_lea.vmem %s699_s29, 512 }
  0x19   : > { %p701_p7 = scmp.lt.s32.totalorder %s226_s16, %s699_s29  ;;  %p702_p10 = scmp.lt.s32.totalorder %s700_s10, %s693_s25 }
  0x1a   : > { %p697_p6 = pneg %p696_p5 }
  0x1b   : > { %p703_p12 = por %p702_p10, %p701_p7 }
  0x1d   : > { %p704_p4 = pnand %p703_p12, %p697_p6 }
  0x1f   : > { %707 = shalt.err (!%p704_p4)
}
  0x20   : > { %s791_s28 = smov 128   ;;  %s792_s9 = smov 8  }
  0x21   : > { %614 = dma.hbm_to_vmem [thread:$0]  (!%p899_p0), %s224_s14, 256, %s226_s16, %s213_s24, %s791_s28, %s791_s28, %s792_s9  }
  0x22   : > { %p233_p13 = scmp.lt.s32.totalorder %s788_s23, 3 }
  0x24   : > { %p234_p2 = pnand %p592_p1, %p233_p13 }
  0x25   : > { %s912_s11 = sand.u32 (!%p234_p2), 1, %s772_s19  }
  0x26   : > { %237 = sbr.rel (%p234_p2) target bundleno = 513 (0x201), region = 32  ;;  %s593_s12 = sshll.u32 (!%p234_p2), %s912_s11, 4 }
  0x27   : > { %s240_s13 = scalar_lea.sflag (!%p234_p2), [#allocation3], %s912_s11  ;;  %s243_s15 = scalar_lea.vmem (!%p234_p2), [#allocation2], %s593_s12 }
  0x2b   : > { %759 = dma.done.wait (%p875_p8), %s240_s13, 256  }
  0x2c   : > { %761 = vsyncadd (%p875_p8), %s240_s13, 4294967040  ;;  %vm302_vm0 = vcmask 1043456   ;;  %v922_v0 = vld [vmem:[%s243_s15] sm:$0xff]  ;;  %v793_v5 = vmov 839922192   ;;  %v314_v7 = vlaneseq  ;;  %v597_v13 = vld [vmem:[%s243_s15 + $0x8] sm:$0xff] }
  0x2d   : > { %v300_v1 = vcombine.high %v922_v0, %v922_v0  ;;  %v303_v2 = vsel %vm302_vm0, %v922_v0, 0.0  ;;  %v312_v6 = vunpack.c.l.s4 %v793_v5  ;;  %v794_v29 = vmov 0   ;;  %p284_p8 = scmp.lt.s32.totalorder %s780_s21, 1  ;;  %v355_v39 = vld [vmem:[%s1006_s1] sm:$0xf]  ;;  %s265_s15 = scalar_lea.vmem [#allocation5], %s593_s12 }
  0x2e   : > { %v315_v9 = vshrl.u32 %v314_v7, 7  ;;  %675 = vset.pattern.permute.xlu1 %v794_v29  ;;  %676 = vset.pattern.permute.xlu0 %v794_v29  ;;  %vm393_vm1 = vcmask 3072   ;;  %v357_v42 = vld [vmem:[%s1007_s2] sm:$0xf]  ;;  %s795_s25 = smov [#allocation5]  }
  0x2f   : > { %v304_v3 = vsel %vm302_vm0, %v300_v1, 0.0  ;;  %v313_v8 = vunpack.c.0.s8 %v312_v6  ;;  %s285_s30 = scalar_select %p284_p8, %s780_s21, 1 }
  0x30   : > { %v305_v4 = vadd.f32 %v304_v3, %v303_v2  ;;  %s712_s27 = sshll.u32 %s795_s25, 4  ;;  %s713_s27 = int_to_ptr.vmem [resolvable:$false] %s712_s27 }
  0x31   : > { %v316_v10 = vsub.s32 %v313_v8, %v315_v9  ;;  %s595_s14 = sshll.u32 %s285_s30, 2  ;;  %s426_s30 = sshll.u32 %s265_s15, 4  ;;  %s952_s30 = int_to_ptr.vmem [resolvable:$true] %s426_s30 }
  0x32   : > { %306 = vadd.xlane.f32.xlu0 %v305_v4  ;;  %s290_s24 = scalar_lea.vmem %s1009_s4, %s595_s14  ;;  %s297_s29 = scalar_lea.vmem %s1010_s5, %s595_s14 }
  0x33   : > { %s606_s14 = sshll.u32 %s780_s21, 8  ;;  %s397_s21 = scalar_lea.sflag [#allocation4], %s912_s11 }
  0x34   : > { %s708_s12 = scalar_lea.vmem %s952_s30, 256  ;;  %p715_p3 = scmp.lt.s32.totalorder %s952_s30, %s713_s27 }
  0x35   : > { %p709_p12 = scmp.ne.s32.totalorder %s952_s30, %s708_s12 }
  0x37   : > { %p710_p0 = pnand %p709_p12, %p879_p9 }
  0x39   : > { %p711_p1 = pneg %p710_p0 }
  0xbb   : > { %v307_v11 = vpop.xlane.xlu0 %306 }
  0xbc   : > { %v309_v12 = vmul.f32 0.00390625, %v307_v11 }
  0xbe   : > { %v317_v14 = vrot.slane %v309_v12, %v316_v10 }
  0xc0   : > { %v319_v15 = vsub.f32 %v922_v0, %v317_v14  ;;  %v325_v16 = vsub.f32 %v597_v13, %v317_v14 }
  0xc2   : > { %v326_v17 = vadd.f32 %v325_v16, %v319_v15  ;;  %v321_v18 = vmul.f32 %v319_v15, %v319_v15  ;;  %v327_v19 = vmul.f32 %v325_v16, %v325_v16 }
  0xc4   : > { %v330_v20 = vcombine.high %v326_v17, %v326_v17  ;;  %v328_v21 = vadd.f32 %v327_v19, %v321_v18  ;;  %v332_v22 = vsel %vm302_vm0, %v326_v17, 0.0 }
  0xc6   : > { %v333_v23 = vsel %vm302_vm0, %v330_v20, 0.0  ;;  %v338_v24 = vcombine.high %v328_v21, %v328_v21  ;;  %v340_v26 = vsel %vm302_vm0, %v328_v21, 0.0 }
  0xc7   : > { %v334_v25 = vadd.f32 %v333_v23, %v332_v22 }
  0xc8   : > { %v341_v27 = vsel %vm302_vm0, %v338_v24, 0.0 }
  0xc9   : > { %335 = vadd.xlane.f32.xlu0 %v334_v25  ;;  %v342_v28 = vadd.f32 %v341_v27, %v340_v26 }
  0xcb   : > { %343 = vadd.xlane.f32.xlu1 %v342_v28 }
 0x152   : > { %v336_v30 = vpop.xlane.xlu0 %335 }
 0x153   : > { %v345_v31 = vmul.f32 0.001953125, %v336_v30 }
 0x154   : > { %v344_v34 = vpop.xlane.xlu1 %343 }
 0x155   : > { %v346_v32 = vadd.f32 %v345_v31, %v309_v12  ;;  %v347_v33 = vmul.f32 %v345_v31, %v336_v30 }
 0x157   : > { %394 = vst.msk [vmem:[%s290_s24] sm:$0xf] %vm393_vm1, %v346_v32  ;;  %v348_v35 = vsub.f32 %v344_v34, %v347_v33  ;;  %s957_s24 = scalar_lea.hbm %s1008_s3, %s606_s14 }
 0x159   : > { %v349_v36 = vmul.f32 0.0019569471, %v348_v35 }
 0x15b   : > { %v350_v37 = vmax.f32 %v349_v36, 0.0 }
 0x15d   : > { %v351_v38 = vadd.f32 1e-05, %v350_v37  ;;  %395 = vst.msk [vmem:[%s297_s29] sm:$0xf] %vm393_vm1, %v350_v37  ;;  %s714_s29 = scalar_lea.vmem %s713_s27, 512 }
 0x15e   : > { %p716_p5 = scmp.lt.s32.totalorder %s714_s29, %s708_s12 }
 0x15f   : > { %678 = vrsqrt.f32 %v351_v38 }
 0x160   : > { %p717_p6 = por %p716_p5, %p715_p3 }
 0x162   : > { %p718_p7 = pnand %p717_p6, %p711_p1 }
 0x16c   : > { %v679_v40 = vpop.eup %678 }
 0x16d   : > { %v358_v41 = vmul.f32 %v679_v40, %v355_v39 }
 0x16f   : > { %363 = vperm.xlu1 %675, %v358_v41   ;;  %v359_v43 = vmul.f32 %v358_v41, %v346_v32 }
 0x171   : > { %v360_v44 = vsub.f32 %v357_v42, %v359_v43 }
 0x173   : > { %376 = vperm.xlu0 %676, %v360_v44  }
 0x1ea   : > { %v364_v45 = vpop.permute.xlu1 %363 }
 0x1eb   : > { %v371_v46 = vrot.slane %v364_v45, %v316_v10 }
 0x1ed   : > { %v373_v48 = vmul.f32 %v371_v46, %v922_v0  ;;  %v389_v49 = vmul.f32 %v597_v13, %v371_v46 }
 0x1ee   : > { %v377_v47 = vpop.permute.xlu0 %376 }
 0x1ef   : > { %v384_v50 = vrot.slane %v377_v47, %v316_v10 }
 0x1f1   : > { %v386_v51 = vadd.f32 %v384_v50, %v373_v48  ;;  %v390_v52 = vadd.f32 %v389_v49, %v384_v50 }
 0x1f3   : > { %387 = vst [vmem:[%s265_s15] sm:$0xff] %v386_v51  ;;  %599 = vst [vmem:[%s265_s15 + $0x8] sm:$0xff] %v390_v52 }
 0x1f4   : > { %721 = shalt.err (!%p718_p7)
}
 0x1f5   : > { %s722_s10 = scalar_lea.hbm %s957_s24, 256  ;;  %s726_s13 = scalar_lea.hbm %s1008_s3, 512 }
 0x1f6   : > { %p723_p10 = scmp.ne.s32.totalorder %s957_s24, %s722_s10  ;;  %p727_p2 = scmp.lt.s32.totalorder %s957_s24, %s1008_s3 }
 0x1f7   : > { %p728_p8 = scmp.lt.s32.totalorder %s726_s13, %s722_s10 }
 0x1f8   : > { %p724_p4 = pnand %p723_p10, %p879_p9 }
 0x1f9   : > { %p729_p12 = por %p728_p8, %p727_p2 }
 0x1fa   : > { %p725_p13 = pneg %p724_p4 }
 0x1fc   : > { %p730_p0 = pnand %p729_p12, %p725_p13 }
 0x1fe   : > { %733 = shalt.err (!%p730_p0)
}
 0x1ff   : > { %s796_s16 = smov 128   ;;  %s797_s17 = smov 8  }
 0x200   : > { %609 = dma.vmem_to_hbm [thread:$0]  (%p879_p9), %s952_s30, 256, %s957_s24, %s397_s21, %s796_s16, %s796_s16, %s797_s17  }
 0x201 PF: > { %s447_s12 = sand.u32 1, %s768_s18   ;;  %p1016_p1 = scmp.ge.s32.totalorder %s788_s23, 2 }
 0x202   : > { %s448_s25 = scalar_lea.sflag [#allocation4], %s447_s12 }
 0x203   : > { %p616_p3 = pnand %p1016_p1, %p886_p11 }
 0x205   : > { %p617_p5 = pneg %p616_p3 }
 0x207   : > { %763 = dma.done.wait (%p617_p5), %s448_s25, 256  }
 0x208   : > { %765 = vsyncadd (%p617_p5), %s448_s25, 4294967040  ;;  %s22_s23 = sadd.s32 1, %s788_s23   ;;  %s1017_s18 = smov %s772_s19 }
 0x209   : > { %p19_p6 = scmp.ge.s32.totalorder %s22_s23, 4   ;;  %s1018_s19 = smov %s776_s20 }
 0x20a   : > { %s1019_s20 = smov %s884_s7  ;;  %s1020_s21 = smov %s784_s22 }
 0x20b   : > { %s1021_s22 = smov %s1023_s26  ;;  %21 = sbr.rel (!%p19_p6) target bundleno = 6 (0x6), region = 105 }
 0x210   :  { %473 = vsyncpa [#allocation3], 1 }
 0x211   :  { %475 = vsyncpa [#allocation3 + $0x1], 1 }
 0x212   :  { %476 = vsyncpa [#allocation4], 1 }
 0x213   :  { %478 = vsyncpa [#allocation4 + $0x1], 1 }

</bundles_post_ra>
